<compile_context>
chip_gen: v5e
topology: v5e:2x2
jax: 0.10.0
libtpu: 0.0.40
codegen_flags: <defaults>
</compile_context>

<pallas_src>
import functools

import jax
import jax.numpy as jnp
from jax.experimental import pallas as pl
from jax.experimental.pallas import tpu as pltpu

LANE = 128


def _round_up(x, m):
    return (x + m - 1) // m * m


# ---------------------------------------------------------------------------
# Kernel bodies
# ---------------------------------------------------------------------------

def _finish_step(slab, is_logit, is_valid):
    """slab: (B, n_pad) f32 fused pre-activations.
       cols [0, hidden)          -> new hidden (i2h output, left untouched)
       cols [hidden, hidden+out) -> i2o logits (replaced by their log-softmax)
       cols [hidden+out, n_pad)  -> zero padding
    Masked, numerically-stable log-softmax; all math in f32, lane-dense layout."""
    masked = jnp.where(is_logit, slab, jnp.float32(-1e30))
    m = jnp.max(masked, axis=1, keepdims=True)
    s = jnp.sum(jnp.where(is_logit, jnp.exp(masked - m), 0.0), axis=1, keepdims=True)
    lse = jnp.log(s) + m
    return jnp.where(is_valid, jnp.where(is_logit, slab - lse, slab), 0.0)


def _rnn_cell_kernel(hidden_size, output_size,
                     x_ref, h_ref, wx_ref, wh_ref, b_ref, out_ref):
    """Single RNN cell step; output is one lane-dense (B, 128) slab."""
    slab = (jnp.dot(x_ref[...], wx_ref[...], preferred_element_type=jnp.float32)
            + jnp.dot(h_ref[...], wh_ref[...], preferred_element_type=jnp.float32)
            + b_ref[...])
    col = jax.lax.broadcasted_iota(jnp.int32, slab.shape, 1)
    is_logit = jnp.logical_and(col >= hidden_size, col < hidden_size + output_size)
    is_valid = col < hidden_size + output_size
    out_ref[...] = _finish_step(slab, is_logit, is_valid)


def _rnn_seq_kernel(hidden_size, output_size, time_block, unroll,
                    x_ref, wx_ref, wh_ref, b_ref, out_ref, h_scr):
    """One whole time chunk per grid step.

    grid = (batch_blocks [parallel], time_chunks [arbitrary]); weights are
    VMEM-resident (constant index_maps); the hidden state is carried in vregs
    across the in-body fori_loop and in a VMEM scratch across time chunks."""
    tc = pl.program_id(1)

    @pl.when(tc == 0)
    def _():
        h_scr[...] = jnp.zeros_like(h_scr)   # initHidden(): zeros

    tb, bb, inp = x_ref.shape
    n_pad = out_ref.shape[2]

    # Non-recurrent x-path for the whole chunk as ONE matmul (fills MXU rows),
    # staged directly into the VMEM-resident output block.
    x2 = x_ref[...].reshape(tb * bb, inp)
    pre = (jnp.dot(x2, wx_ref[...], preferred_element_type=jnp.float32)
           + b_ref[...]).reshape(tb, bb, n_pad)
    out_ref[...] = pre

    wh = wh_ref[...]
    # Column masks hoisted out of the loop (broadcast_in_dim is not CSE'd).
    col = jax.lax.broadcasted_iota(jnp.int32, (bb, n_pad), 1)
    is_logit = jnp.logical_and(col >= hidden_size, col < hidden_size + output_size)
    is_valid = col < hidden_size + output_size

    def step(t, h):
        slab = out_ref[t] + jnp.dot(h, wh, preferred_element_type=jnp.float32)
        out_ref[t] = _finish_step(slab, is_logit, is_valid)
        return slab[:, :hidden_size].astype(h.dtype)   # carry hidden cols only

    h_final = jax.lax.fori_loop(0, time_block, step, h_scr[...], unroll=unroll)
    h_scr[...] = h_final                               # carry across time chunks


# ---------------------------------------------------------------------------
# Wrappers
# ---------------------------------------------------------------------------

def prepare_params(w_i2h, b_i2h, w_i2o, b_i2o, input_size, hidden_size, output_size,
                   compute_dtype=jnp.float32):
    """One-time prep (hoisted out of the per-step path): fuse i2h|i2o, transpose
    torch (out,in) -> (in,out), zero-pad the fused output axis to a lane multiple
    (128), split rows into Wx / Wh, and cast matmul operands to compute_dtype
    (bf16 for MXU-native operands; bias stays f32 for the f32 accumulate)."""
    n_out = hidden_size + output_size
    n_pad = _round_up(n_out, LANE)
    w_fused = jnp.concatenate([jnp.asarray(w_i2h, jnp.float32),
                               jnp.asarray(w_i2o, jnp.float32)], axis=0)   # (n_out, fan_in)
    wt = jnp.pad(w_fused.T, ((0, 0), (0, n_pad - n_out)))                  # (fan_in, n_pad)
    b = jnp.pad(jnp.concatenate([jnp.asarray(b_i2h, jnp.float32),
                                 jnp.asarray(b_i2o, jnp.float32)]),
                (0, n_pad - n_out)).reshape(1, n_pad)
    wx = wt[:input_size].astype(compute_dtype)                             # (input,  n_pad)
    wh = wt[input_size:].astype(compute_dtype)                             # (hidden, n_pad)
    return wx, wh, b


def rnn_forward(x, h, wx, wh, b, hidden_size, output_size):
    """One cell step (matches RNN.forward). x: (B, input), h: (B, hidden).
    Returns (log_softmax_output (B, output), new_hidden (B, hidden)).
    For whole sequences prefer rnn_sequence (single launch, no host round trips)."""
    B = x.shape[0]
    n_pad = wx.shape[1]
    cdt = wx.dtype
    vmem = pl.BlockSpec(memory_space=pltpu.MemorySpace.VMEM)
    packed = pl.pallas_call(
        functools.partial(_rnn_cell_kernel, hidden_size, output_size),
        out_shape=jax.ShapeDtypeStruct((B, n_pad), jnp.float32),
        in_specs=[vmem] * 5,
        out_specs=vmem,
    )(jnp.asarray(x, cdt), jnp.asarray(h, cdt), wx, wh, b)
    return (packed[:, hidden_size:hidden_size + output_size],
            packed[:, :hidden_size])


def rnn_sequence(x_seq, wx, wh, b, hidden_size, output_size,
                 time_block=None, b_block=None, vmem_limit_bytes=None):
    """Full sequence (zero initial hidden). x_seq: (T, B, input).
    Returns (log_softmax outputs (T, B, output), final hidden (B, hidden))."""
    T, B, input_size = x_seq.shape
    n_pad = wx.shape[1]
    cdt = wx.dtype
    if time_block is None:
        time_block = min(T, 128)        # chunk long sequences per grid step
    if b_block is None:
        b_block = B                     # shrink to shard batch over v7x's 2 TCs
    assert T % time_block == 0 and B % b_block == 0
    assert b_block == B or b_block % 8 == 0
    unroll = time_block <= 32           # short fixed chunks: fully unroll

    grid_spec = pltpu.PrefetchScalarGridSpec(
        num_scalar_prefetch=0,
        grid=(B // b_block, T // time_block),
        in_specs=[
            pl.BlockSpec((time_block, b_block, input_size), lambda bb, tc: (tc, bb, 0)),
            pl.BlockSpec((input_size, n_pad), lambda bb, tc: (0, 0)),   # weights resident
            pl.BlockSpec((hidden_size, n_pad), lambda bb, tc: (0, 0)),
            pl.BlockSpec((1, n_pad), lambda bb, tc: (0, 0)),
        ],
        out_specs=pl.BlockSpec((time_block, b_block, n_pad), lambda bb, tc: (tc, bb, 0)),
        scratch_shapes=[pltpu.VMEM((b_block, hidden_size), cdt)],
    )
    packed_seq = pl.pallas_call(
        functools.partial(_rnn_seq_kernel, hidden_size, output_size,
                          time_block, unroll),
        out_shape=jax.ShapeDtypeStruct((T, B, n_pad), jnp.float32),
        grid_spec=grid_spec,
        compiler_params=pltpu.CompilerParams(
            # batch blocks independent (megacore); hidden carried across time.
            dimension_semantics=("parallel", "arbitrary"),
            vmem_limit_bytes=vmem_limit_bytes,  # set explicitly when weights scale up
        ),
    )(jnp.asarray(x_seq, cdt), wx, wh, b)
    outs = packed_seq[:, :, hidden_size:hidden_size + output_size]
    h_final = packed_seq[-1, :, :hidden_size]
    return outs, h_final


# ---------------------------------------------------------------------------
# Init + reference + demo
# ---------------------------------------------------------------------------

def init_params(key, input_size, hidden_size, output_size):
    """Deterministic init mimicking nn.Linear default U(-1/sqrt(fan_in), 1/sqrt(fan_in))."""
    fan_in = input_size + hidden_size
    bound = 1.0 / jnp.sqrt(jnp.float32(fan_in))
    k1, k2, k3, k4 = jax.random.split(key, 4)
    w_i2h = jax.random.uniform(k1, (hidden_size, fan_in), jnp.float32, -bound, bound)
    b_i2h = jax.random.uniform(k2, (hidden_size,), jnp.float32, -bound, bound)
    w_i2o = jax.random.uniform(k3, (output_size, fan_in), jnp.float32, -bound, bound)
    b_i2o = jax.random.uniform(k4, (output_size,), jnp.float32, -bound, bound)
    return w_i2h, b_i2h, w_i2o, b_i2o


def _ref_cell(x, h, w_i2h, b_i2h, w_i2o, b_i2o, compute_dtype=jnp.float32):
    """Pure-JAX reference; compute_dtype mirrors the kernel's operand rounding."""
    combined = jnp.concatenate([x, h], axis=1).astype(compute_dtype)
    new_h = (jnp.dot(combined, w_i2h.T.astype(compute_dtype),
                     preferred_element_type=jnp.float32) + b_i2h)
    logits = (jnp.dot(combined, w_i2o.T.astype(compute_dtype),
                      preferred_element_type=jnp.float32) + b_i2o)
    out = logits - jax.scipy.special.logsumexp(logits, axis=1, keepdims=True)
    return out, new_h


if __name__ == "__main__":
    input_size, hidden_size, output_size = 16, 32, 8
    batch, seq_len = 8, 8   # batch >= 8 fills vreg sublanes / MXU rows

    key = jax.random.PRNGKey(0)
    k_params, k_x, k_seq = jax.random.split(key, 3)
    w_i2h, b_i2h, w_i2o, b_i2o = init_params(k_params, input_size, hidden_size, output_size)

    x = jax.random.normal(k_x, (batch, input_size), jnp.float32)
    h0 = jnp.zeros((batch, hidden_size), jnp.float32)   # initHidden() broadcast to batch
    x_seq = jax.random.normal(k_seq, (seq_len, batch, input_size), jnp.float32)

    # --- f32 path: tight check against the f32 reference ---
    wx, wh, b = prepare_params(w_i2h, b_i2h, w_i2o, b_i2o,
                               input_size, hidden_size, output_size)

    out, new_h = rnn_forward(x, h0, wx, wh, b, hidden_size, output_size)
    jax.block_until_ready((out, new_h))
    ref_out, ref_h = _ref_cell(x, h0, w_i2h, b_i2h, w_i2o, b_i2o)
    assert jnp.allclose(out, ref_out, atol=1e-4), "single-step output mismatch"
    assert jnp.allclose(new_h, ref_h, atol=1e-4), "single-step hidden mismatch"

    outs, h_final = rnn_sequence(x_seq, wx, wh, b, hidden_size, output_size)
    jax.block_until_ready((outs, h_final))
    h = h0
    for t in range(seq_len):
        o_ref, h = _ref_cell(x_seq[t], h, w_i2h, b_i2h, w_i2o, b_i2o)
        assert jnp.allclose(outs[t], o_ref, atol=1e-4), f"seq output mismatch (f32) t={t}"
    assert jnp.allclose(h_final, h, atol=1e-4), "seq final hidden mismatch (f32)"

    # --- bf16 MXU operands (f32 accumulation, f32 softmax), checked against a
    #     reference that mirrors the bf16 operand rounding ---
    wx16, wh16, b16 = prepare_params(w_i2h, b_i2h, w_i2o, b_i2o,
                                     input_size, hidden_size, output_size,
                                     compute_dtype=jnp.bfloat16)
    outs16, h16 = rnn_sequence(x_seq, wx16, wh16, b16, hidden_size, output_size)
    jax.block_until_ready((outs16, h16))
    h = h0
    for t in range(seq_len):
        o_ref, h = _ref_cell(x_seq[t], h, w_i2h, b_i2h, w_i2o, b_i2o,
                             compute_dtype=jnp.bfloat16)
        assert jnp.allclose(outs16[t], o_ref, atol=2e-2), f"seq output mismatch (bf16) t={t}"
    assert jnp.allclose(h16, h, atol=2e-2), "seq final hidden mismatch (bf16)"

    print("KERNEL_OK")
</pallas_src>

<mosaic_0001>
module attributes {stable_mosaic.version = 11 : i64} {
  func.func @_rnn_cell_kernel(%arg0: memref<8x16xf32, #tpu.memory_space<vmem>>, %arg1: memref<8x32xf32, #tpu.memory_space<vmem>>, %arg2: memref<16x128xf32, #tpu.memory_space<vmem>>, %arg3: memref<32x128xf32, #tpu.memory_space<vmem>>, %arg4: memref<1x128xf32, #tpu.memory_space<vmem>>, %arg5: memref<8x128xf32, #tpu.memory_space<vmem>>) attributes {dimension_semantics = [], scalar_prefetch = 0 : i64, scratch_operands = 0 : i64, tpu.core_type = #tpu.core_type<tc>} {
    %c0 = arith.constant 0 : index
    %c0_0 = arith.constant 0 : index
    %0 = vector.load %arg0[%c0, %c0_0] : memref<8x16xf32, #tpu.memory_space<vmem>>, vector<8x16xf32>
    %c0_1 = arith.constant 0 : index
    %c0_2 = arith.constant 0 : index
    %1 = vector.load %arg2[%c0_1, %c0_2] : memref<16x128xf32, #tpu.memory_space<vmem>>, vector<16x128xf32>
    %cst = arith.constant dense<0.000000e+00> : vector<8x128xf32>
    %2 = tpu.matmul %0, %1, %cst {dimension_numbers = #tpu.dot_dimension_numbers<[1], [0], [0], [1], [0, 0, 1, 1], [], []>} : vector<8x16xf32>, vector<16x128xf32>, vector<8x128xf32> -> vector<8x128xf32>
    %c0_3 = arith.constant 0 : index
    %c0_4 = arith.constant 0 : index
    %3 = vector.load %arg1[%c0_3, %c0_4] : memref<8x32xf32, #tpu.memory_space<vmem>>, vector<8x32xf32>
    %c0_5 = arith.constant 0 : index
    %c0_6 = arith.constant 0 : index
    %4 = vector.load %arg3[%c0_5, %c0_6] : memref<32x128xf32, #tpu.memory_space<vmem>>, vector<32x128xf32>
    %cst_7 = arith.constant dense<0.000000e+00> : vector<8x128xf32>
    %5 = tpu.matmul %3, %4, %cst_7 {dimension_numbers = #tpu.dot_dimension_numbers<[1], [0], [0], [1], [0, 0, 1, 1], [], []>} : vector<8x32xf32>, vector<32x128xf32>, vector<8x128xf32> -> vector<8x128xf32>
    %6 = arith.addf %2, %5 : vector<8x128xf32>
    %c0_8 = arith.constant 0 : index
    %c0_9 = arith.constant 0 : index
    %7 = vector.load %arg4[%c0_8, %c0_9] : memref<1x128xf32, #tpu.memory_space<vmem>>, vector<1x128xf32>
    %8 = vector.broadcast %7 : vector<1x128xf32> to vector<8x128xf32>
    %9 = arith.addf %6, %8 : vector<8x128xf32>
    %10 = tpu.iota {dimensions = array<i32: 1>} : vector<8x128xi32>
    %c32_i32 = arith.constant 32 : i32
    %11 = vector.broadcast %c32_i32 : i32 to vector<8x128xi32>
    %12 = arith.cmpi sge, %10, %11 : vector<8x128xi32>
    %c40_i32 = arith.constant 40 : i32
    %13 = vector.broadcast %c40_i32 : i32 to vector<8x128xi32>
    %14 = arith.cmpi slt, %10, %13 : vector<8x128xi32>
    %15 = arith.andi %12, %14 : vector<8x128xi1>
    %c40_i32_10 = arith.constant 40 : i32
    %16 = vector.broadcast %c40_i32_10 : i32 to vector<8x128xi32>
    %17 = arith.cmpi slt, %10, %16 : vector<8x128xi32>
    %cst_11 = arith.constant -1.000000e+30 : f32
    %18 = vector.broadcast %cst_11 : f32 to vector<8x128xf32>
    %19 = arith.select %15, %9, %18 : vector<8x128xi1>, vector<8x128xf32>
    %cst_12 = arith.constant dense<0xFF800000> : vector<8xf32>
    %20 = vector.multi_reduction <maximumf>, %19, %cst_12 [1] : vector<8x128xf32> to vector<8xf32>
    %21 = vector.shape_cast %20 : vector<8xf32> to vector<8x1xf32>
    %22 = vector.broadcast %21 : vector<8x1xf32> to vector<8x128xf32>
    %23 = arith.subf %19, %22 : vector<8x128xf32>
    %24 = math.exp %23 : vector<8x128xf32>
    %cst_13 = arith.constant 0.000000e+00 : f32
    %25 = vector.broadcast %cst_13 : f32 to vector<8x128xf32>
    %26 = arith.select %15, %24, %25 : vector<8x128xi1>, vector<8x128xf32>
    %cst_14 = arith.constant dense<0.000000e+00> : vector<8xf32>
    %27 = vector.multi_reduction <add>, %26, %cst_14 [1] : vector<8x128xf32> to vector<8xf32>
    %28 = vector.shape_cast %27 : vector<8xf32> to vector<8x1xf32>
    %29 = math.log %28 : vector<8x1xf32>
    %30 = arith.addf %29, %21 : vector<8x1xf32>
    %31 = vector.broadcast %30 : vector<8x1xf32> to vector<8x128xf32>
    %32 = arith.subf %9, %31 : vector<8x128xf32>
    %33 = arith.select %15, %32, %9 : vector<8x128xi1>, vector<8x128xf32>
    %cst_15 = arith.constant 0.000000e+00 : f32
    %34 = vector.broadcast %cst_15 : f32 to vector<8x128xf32>
    %35 = arith.select %17, %33, %34 : vector<8x128xi1>, vector<8x128xf32>
    %c0_16 = arith.constant 0 : index
    %c0_17 = arith.constant 0 : index
    %36 = vector.load %arg5[%c0_16, %c0_17] : memref<8x128xf32, #tpu.memory_space<vmem>>, vector<8x128xf32>
    tpu.vector_store %arg5[%c0_16, %c0_17], %35 {strides = array<i32>} : memref<8x128xf32, #tpu.memory_space<vmem>>, vector<8x128xf32>,
    return
  }
}

</mosaic_0001>

<bundles_post_ra>
// kernel: tpu_custom_call.1
= control target key start
LH: loop header
LB: loop body
LE: loop exit
PB: predicated region body
PF: predicated region fallthrough
CT: control target
= control target key end

     0   :  { %10 = vsyncpa [#allocation3], 0  ;;  %s390_s0 = inlined_call_operand.hbm [shape: f32[8,16], index: 0, kind: input, shape index: {}]   ;;  %s391_s1 = inlined_call_operand.hbm [shape: f32[8,32], index: 1, kind: input, shape index: {}]   ;;  %s392_s2 = inlined_call_operand.hbm [shape: f32[16,128], index: 2, kind: input, shape index: {}]   ;;  %s393_s3 = inlined_call_operand.hbm [shape: f32[32,128], index: 3, kind: input, shape index: {}]   ;;  %s394_s4 = inlined_call_operand.vmem [shape: f32[1,128], index: 4, kind: input, shape index: {}]   ;;  %s395_s5 = inlined_call_operand.hbm [shape: f32[8,128], index: 5, kind: output, shape index: {}]  }
   0x1   :  { %11 = vsyncpa [#allocation6], 0 }
   0x2   :  { %12 = vsyncpa [#allocation9], 0  ;;  %s30_s20 = sshll.u32 %s391_s1, 4  ;;  %s31_s20 = int_to_ptr.hbm [resolvable:$true] %s30_s20 }
   0x3   :  { %13 = vsyncpa [#allocation4], 0  ;;  %s323_s21 = smov [#allocation5]   ;;  %s19_s25 = sshll.u32 %s390_s0, 4  ;;  %s20_s25 = int_to_ptr.hbm [resolvable:$true] %s19_s25 }
   0x4   :  { %s32_s22 = sshll.u32 %s323_s21, 4  ;;  %s324_s26 = smov [#allocation2]   ;;  %s33_s22 = int_to_ptr.vmem [resolvable:$true] %s32_s22 }
   0x5   :  { %35 = dma.hbm_to_vmem [thread:$0]  %s31_s20, 128, %s33_s22, [#allocation6]  }
   0x6   :  { %s21_s27 = sshll.u32 %s324_s26, 4  ;;  %s40_s30 = sshll.u32 %s392_s2, 4  ;;  %s22_s27 = int_to_ptr.vmem [resolvable:$true] %s21_s27  ;;  %s41_s30 = int_to_ptr.hbm [resolvable:$true] %s40_s30 }
   0x7   :  { %24 = dma.hbm_to_vmem [thread:$0]  %s20_s25, 128, %s22_s27, [#allocation3]  }
   0x8   :  { %s325_s1 = smov [#allocation7]   ;;  %s53_s9 = sshll.u32 %s393_s3, 4  ;;  %s54_s9 = int_to_ptr.hbm [resolvable:$true] %s53_s9 }
   0x9   :  { %s42_s6 = sshll.u32 %s325_s1, 4  ;;  %s326_s10 = smov 128   ;;  %s43_s6 = int_to_ptr.vmem [resolvable:$true] %s42_s6 }
   0xa   :  { %s327_s0 = smov 8   ;;  %s328_s11 = smov [#allocation8]  }
   0xb   :  { %48 = dma.hbm_to_vmem [thread:$0]  %s41_s30, 256, %s43_s6, [#allocation6], %s326_s10, %s326_s10, %s327_s0  }
   0xc   :  { %s55_s12 = sshll.u32 %s328_s11, 4  ;;  %s56_s12 = int_to_ptr.vmem [resolvable:$true] %s55_s12 }
   0xd   :  { %61 = dma.hbm_to_vmem [thread:$0]  %s54_s9, 512, %s56_s12, [#allocation9], %s326_s10, %s326_s10, %s327_s0  }
   0xe   :  { %315 = dma.done.wait [#allocation3], 128  }
   0xf   :  { %316 = vsyncadd [#allocation3], 4294967168 }
  0x10   :  { %317 = dma.done.wait [#allocation6], 384  }
  0x11   :  { %318 = vsyncadd [#allocation6], 4294966912 }
  0x12   :  { %319 = dma.done.wait [#allocation9], 512  }
  0x13   :  { %320 = vsyncadd [#allocation9], 4294966784  ;;  %v87_v0 = vld [vmem:[#allocation8 + $0x18] sm:$0xff]  ;;  %v86_v1 = vld [vmem:[#allocation8 + $0x10] sm:$0xff]  ;;  %vm112_vm0 = vcmask 130048   ;;  %vm88_vm1 = vcmask 261120   ;;  %v141_v8 = vlaneseq }
  0x14   :  { %104 = vmatpush.msra.mxu0 %v87_v0  ;;  %v82_v2 = vld [vmem:[#allocation7 + $0x8] sm:$0xff]  ;;  %v81_v3 = vld [vmem:[#allocation7] sm:$0xff]  ;;  %v85_v4 = vld [vmem:[#allocation8 + $0x8] sm:$0xff]  ;;  %s169_s16 = sshll.u32 %s395_s5, 4  ;;  %s170_s16 = int_to_ptr.hbm [resolvable:$true] %s169_s16 }
  0x15   :  { %130 = vmatpush.msra.mxu1 %v82_v2  ;;  %v80_v5 = vld [vmem:[#allocation2] sm:$0xff]  ;;  %v83_v7 = vld [vmem:[#allocation5] sm:$0xff]  ;;  %v142_v9 = vand.u32 127, %v141_v8 }
  0x16   :  { %105 = vmatpush.msra.mxu0 %v86_v1  ;;  %v84_v6 = vld [vmem:[#allocation8] sm:$0xff] }
  0x17   :  { %131 = vmatpush.msra.mxu1 %v81_v3  ;;  %v190_v11 = vld [vmem:[%s394_s4] ss:$0 sm:$0xff]  ;;  %vm143_vm2 = vcmp.ge.s32.totalorder %v142_v9, 32  ;;  %vm144_vm3 = vcmp.lt.s32.totalorder %v142_v9, 40  ;;  %s329_s4 = smov [#allocation10]  }
  0x18   :  { %106 = vmatpush.msra.mxu0 %v85_v4  ;;  %182 = vmatmul.msk.f32.vlgmr.msra.gmra.mxu1 %vm112_vm0, %v80_v5  ;;  %vm376_vm4 = vmand %vm143_vm2, %vm144_vm3  ;;  %s167_s13 = sshll.u32 %s329_s4, 4  ;;  %s168_s13 = int_to_ptr.vmem [resolvable:$true] %s167_s13 }
  0x1a   :  { %107 = vmatpush.msra.mxu0 %v84_v6 }
  0x1b   :  { %181 = vmatmul.msk.f32.vlgmr.msra.gmra.mxu0 %vm88_vm1, %v83_v7 }
  0x95   :  { %v133_v10 = vpop.f32.mrf.mxu1 }
  0x98   :  { %v109_v12 = vpop.f32.mrf.mxu0 }
  0x99   :  { %v134_v13 = vadd.f32 %v133_v10, %v109_v12 }
  0x9b   :  { %v140_v15 = vadd.f32 %v190_v11, %v134_v13 }
  0x9d   :  { %v146_v16 = vsel %vm376_vm4, %v140_v15, -1e+30 }
  0x9e   :  { %147 = vmax.xlane.f32.xlu0 %v146_v16 }
 0x111   :  { %v148_v17 = vpop.xlane.xlu0 %147 }
 0x112   :  { %v149_v18 = vsub.f32 %v146_v16, %v148_v17 }
 0x114   :  { %v150_v19 = vmul.f32 1.442695, %v149_v18 }
 0x116   :  { %191 = vpow2.f32 %v150_v19 }
 0x11c   :  { %v192_v20 = vpop.eup %191 }
 0x11d   :  { %v152_v21 = vsel %vm376_vm4, %v192_v20, 0.0 }
 0x11e   :  { %153 = vadd.xlane.f32.xlu0 %v152_v21 }
 0x191   :  { %v154_v22 = vpop.xlane.xlu0 %153 }
 0x192   :  { %193 = vlog2.f32 %v154_v22 }
 0x198   :  { %v194_v23 = vpop.eup %193 }
 0x199   :  { %v156_v24 = vmul.f32 0.6931472, %v194_v23 }
 0x19b   :  { %v157_v25 = vadd.f32 %v156_v24, %v148_v17 }
 0x19d   :  { %v158_v26 = vsub.f32 %v140_v15, %v157_v25 }
 0x19f   :  { %v159_v27 = vsel %vm376_vm4, %v158_v26, %v140_v15 }
 0x1a0   :  { %v160_v28 = vsel %vm144_vm3, %v159_v27, 0.0 }
 0x1a1   :  { %161 = vst [vmem:[#allocation10] sm:$0xff] %v160_v28 }
 0x1a2   :  { %172 = dma.vmem_to_hbm [thread:$0]  %s168_s13, 128, %s170_s16, [#allocation4]  }
 0x1a3   :  { %321 = dma.done.wait [#allocation4], 128  }
 0x1a4   :  { %322 = vsyncadd [#allocation4], 4294967168 }
 0x1a5   :  { %177 = vsyncpa [#allocation3], 1 }
 0x1a6   :  { %178 = vsyncpa [#allocation6], 1 }
 0x1a7   :  { %179 = vsyncpa [#allocation9], 1 }
 0x1a8   :  { %180 = vsyncpa [#allocation4], 1 }

</bundles_post_ra>
